<compile_context>
chip_gen: v6e
topology: v6e:2x2x1
jax: 0.10.0
libtpu: 0.0.40
codegen_flags: <defaults>
</compile_context>

<pallas_src>
import numpy as np
import jax
import jax.numpy as jnp
from jax.experimental import pallas as pl
from jax.experimental.pallas import tpu as pltpu

PATCH_SIZE = 2
LN_EPS = 1e-5  # torch.nn.LayerNorm default


def _patch_embed_kernel(p_ref, w_ref, b_ref, g_ref, beta_ref, pos_ref, o_ref):
    # p_ref:    (patch_dim, Lp)   transposed patches for one batch element
    # w_ref:    (emb, patch_dim)  Linear weight in (out, in) orientation
    # b_ref:    (emb, 1)          Linear bias
    # g_ref:    (emb, 1)          LayerNorm gamma
    # beta_ref: (emb, 1)          LayerNorm beta
    # pos_ref:  (emb, Lp)         positional encoding (PyTorch layout, zero-padded)
    # o_ref:    (emb, Lp)         output in PyTorch (emb, L) layout
    y = jnp.dot(w_ref[...], p_ref[...], preferred_element_type=jnp.float32)
    y = y + b_ref[...]                                    # (emb, Lp)

    # LayerNorm over the embedding axis (sublane axis, axis 0).
    mu = jnp.mean(y, axis=0, keepdims=True)               # (1, Lp)
    var = jnp.mean(jnp.square(y - mu), axis=0, keepdims=True)
    y = (y - mu) * jax.lax.rsqrt(var + LN_EPS)             # rsqrt -> EUP slot
    y = y * g_ref[...] + beta_ref[...]

    # Positional encoding add; lane-dense store directly in (emb, L) layout.
    o_ref[...] = (y + pos_ref[...]).astype(o_ref.dtype)


def _unfold_to_patches_t(x, k, stride):
    """Replicates nn.Unfold(kernel_size=k, stride=stride, padding=0).

    Returns (B, C*k*k, L) with PyTorch's (c, ki, kj) channel-major ordering along
    axis 1 — i.e. exactly the Unfold output layout (already 'transposed' for the
    lane-dense kernel orientation)."""
    B, C, H, W = x.shape
    Ho = (H - k) // stride + 1
    Wo = (W - k) // stride + 1
    L = Ho * Wo
    rows = []
    for c in range(C):
        for ki in range(k):
            for kj in range(k):
                rows.append(
                    x[:, c, ki:ki + stride * Ho:stride, kj:kj + stride * Wo:stride]
                    .reshape(B, L))
    return jnp.stack(rows, axis=1)  # (B, C*k*k, L)


def patch_embedding_forward(x, w, b, gamma, beta, positions,
                            patch_size=PATCH_SIZE, stride=1):
    """x: (B, C, H, W) float32 (NCHW, like PyTorch). Returns (B, emb, L)."""
    B, C, H, W = x.shape
    k = patch_size
    Ho = (H - k) // stride + 1
    Wo = (W - k) // stride + 1
    L = Ho * Wo
    patch_dim = C * k * k
    emb = w.shape[1]
    Lp = ((L + 127) // 128) * 128          # pad L so the lane axis is fully dense

    patches_t = _unfold_to_patches_t(x, k, stride)        # (B, patch_dim, L)
    if Lp != L:
        patches_t = jnp.pad(patches_t, ((0, 0), (0, 0), (0, Lp - L)))
        pos_p = jnp.pad(positions, ((0, 0), (0, Lp - L)))
    else:
        pos_p = positions

    w_t = w.T                                             # (emb, patch_dim)
    b2 = b.reshape(emb, 1)
    g2 = gamma.reshape(emb, 1)
    beta2 = beta.reshape(emb, 1)

    out = pl.pallas_call(
        _patch_embed_kernel,
        out_shape=jax.ShapeDtypeStruct((B, emb, Lp), jnp.float32),
        grid=(B,),
        in_specs=[
            # batch dim squeezed out of the block (None) -> 2-D tiles in-kernel
            pl.BlockSpec((None, patch_dim, Lp), lambda i: (i, 0, 0)),
            pl.BlockSpec((emb, patch_dim), lambda i: (0, 0)),   # resident
            pl.BlockSpec((emb, 1), lambda i: (0, 0)),           # resident
            pl.BlockSpec((emb, 1), lambda i: (0, 0)),           # resident
            pl.BlockSpec((emb, 1), lambda i: (0, 0)),           # resident
            pl.BlockSpec((emb, Lp), lambda i: (0, 0)),          # resident
        ],
        out_specs=pl.BlockSpec((None, emb, Lp), lambda i: (i, 0, 0)),
        compiler_params=pltpu.CompilerParams(
            dimension_semantics=("parallel",)),   # 2-way split -> both TCs on v7x
    )(patches_t, w_t, b2, g2, beta2, pos_p)

    # Drop the lane padding; output is already in the PyTorch (B, emb, L) layout.
    return out[:, :, :L]


def _reference_forward(x, w, b, gamma, beta, positions,
                       patch_size=PATCH_SIZE, stride=1):
    """Pure-JAX reference for correctness checking (mirrors the PyTorch module)."""
    patches_t = _unfold_to_patches_t(x, patch_size, stride)   # (B, patch_dim, L)
    patches = jnp.transpose(patches_t, (0, 2, 1))             # (B, L, patch_dim)
    y = patches @ w + b                                       # (B, L, emb)
    mu = jnp.mean(y, axis=-1, keepdims=True)
    var = jnp.mean(jnp.square(y - mu), axis=-1, keepdims=True)
    y = (y - mu) / jnp.sqrt(var + LN_EPS)
    y = y * gamma + beta
    y = jnp.transpose(y, (0, 2, 1))                           # (B, emb, L)
    return y + positions[None]


if __name__ == "__main__":
    # Small, module-consistent shapes:
    #   batch=2, in_channels=4, img_size=16, patch_size=2, stride=1, emb_size=32
    B, C, IMG, EMB = 2, 4, 16, 32
    k, stride = PATCH_SIZE, 1
    patch_dim = C * k * k                 # 16
    L = ((IMG - k) // stride + 1) ** 2    # 225 (matches the module's self.L)

    key = jax.random.PRNGKey(0)
    kx, kw, kb, kpos = jax.random.split(key, 4)

    x = jax.random.normal(kx, (B, C, IMG, IMG), dtype=jnp.float32)

    # Deterministic synthetic parameters (shapes from the module's __init__).
    w = jax.random.normal(kw, (patch_dim, EMB), dtype=jnp.float32) * 0.05  # Linear weight^T
    b = jax.random.normal(kb, (EMB,), dtype=jnp.float32) * 0.05            # Linear bias
    gamma = jnp.ones((EMB,), dtype=jnp.float32)                            # LayerNorm weight
    beta = jnp.zeros((EMB,), dtype=jnp.float32)                            # LayerNorm bias
    positions = jax.random.normal(kpos, (EMB, L), dtype=jnp.float32)       # PositionalEncoding

    out = patch_embedding_forward(x, w, b, gamma, beta, positions)
    out = jax.block_until_ready(out)

    assert out.shape == (B, EMB, L), out.shape
    ref = jax.block_until_ready(_reference_forward(x, w, b, gamma, beta, positions))
    np.testing.assert_allclose(np.asarray(out), np.asarray(ref), rtol=1e-4, atol=1e-4)

    print("KERNEL_OK")
</pallas_src>

<mosaic_0001>
module attributes {stable_mosaic.version = 11 : i64} {
  func.func @_patch_embed_kernel(%arg0: i32, %arg1: memref<1x16x256xf32, #tpu.memory_space<vmem>>, %arg2: memref<32x16xf32, #tpu.memory_space<vmem>>, %arg3: memref<32x1xf32, #tpu.memory_space<vmem>>, %arg4: memref<32x1xf32, #tpu.memory_space<vmem>>, %arg5: memref<32x1xf32, #tpu.memory_space<vmem>>, %arg6: memref<32x256xf32, #tpu.memory_space<vmem>>, %arg7: memref<1x32x256xf32, #tpu.memory_space<vmem>>) attributes {dimension_semantics = [#tpu.dimension_semantics<parallel>], iteration_bounds = array<i64: 2>, scalar_prefetch = 0 : i64, scratch_operands = 0 : i64, tpu.core_type = #tpu.core_type<tc>, window_params = [{transform_indices = @transform_0, window_bounds = array<i64: 1, 16, 256>}, {pipeline_mode = #tpu.pipeline_mode<synchronous>, transform_indices = @transform_1, window_bounds = array<i64: 32, 16>}, {pipeline_mode = #tpu.pipeline_mode<synchronous>, transform_indices = @transform_2, window_bounds = array<i64: 32, 1>}, {pipeline_mode = #tpu.pipeline_mode<synchronous>, transform_indices = @transform_3, window_bounds = array<i64: 32, 1>}, {pipeline_mode = #tpu.pipeline_mode<synchronous>, transform_indices = @transform_4, window_bounds = array<i64: 32, 1>}, {pipeline_mode = #tpu.pipeline_mode<synchronous>, transform_indices = @transform_5, window_bounds = array<i64: 32, 256>}, {transform_indices = @transform_6, window_bounds = array<i64: 1, 32, 256>}]} {
    %c0 = arith.constant 0 : index
    %c0_0 = arith.constant 0 : index
    %0 = vector.load %arg2[%c0, %c0_0] : memref<32x16xf32, #tpu.memory_space<vmem>>, vector<32x16xf32>
    %c0_1 = arith.constant 0 : index
    %c0_2 = arith.constant 0 : index
    %c0_3 = arith.constant 0 : index
    %1 = vector.load %arg1[%c0_1, %c0_2, %c0_3] : memref<1x16x256xf32, #tpu.memory_space<vmem>>, vector<1x16x256xf32>
    %2 = vector.shape_cast %1 : vector<1x16x256xf32> to vector<16x256xf32>
    %cst = arith.constant dense<0.000000e+00> : vector<32x256xf32>
    %3 = tpu.matmul %0, %2, %cst {dimension_numbers = #tpu.dot_dimension_numbers<[1], [0], [0], [1], [0, 0, 1, 1], [], []>} : vector<32x16xf32>, vector<16x256xf32>, vector<32x256xf32> -> vector<32x256xf32>
    %c0_4 = arith.constant 0 : index
    %c0_5 = arith.constant 0 : index
    %4 = vector.load %arg3[%c0_4, %c0_5] : memref<32x1xf32, #tpu.memory_space<vmem>>, vector<32x1xf32>
    %5 = vector.broadcast %4 : vector<32x1xf32> to vector<32x256xf32>
    %6 = arith.addf %3, %5 : vector<32x256xf32>
    %cst_6 = arith.constant dense<0.000000e+00> : vector<256xf32>
    %7 = vector.multi_reduction <add>, %6, %cst_6 [0] : vector<32x256xf32> to vector<256xf32>
    %8 = vector.shape_cast %7 : vector<256xf32> to vector<1x256xf32>
    %cst_7 = arith.constant 3.200000e+01 : f32
    %9 = vector.broadcast %cst_7 : f32 to vector<1x256xf32>
    %10 = arith.divf %8, %9 : vector<1x256xf32>
    %11 = vector.broadcast %10 : vector<1x256xf32> to vector<32x256xf32>
    %12 = arith.subf %6, %11 : vector<32x256xf32>
    %13 = arith.mulf %12, %12 : vector<32x256xf32>
    %cst_8 = arith.constant dense<0.000000e+00> : vector<256xf32>
    %14 = vector.multi_reduction <add>, %13, %cst_8 [0] : vector<32x256xf32> to vector<256xf32>
    %15 = vector.shape_cast %14 : vector<256xf32> to vector<1x256xf32>
    %cst_9 = arith.constant 3.200000e+01 : f32
    %16 = vector.broadcast %cst_9 : f32 to vector<1x256xf32>
    %17 = arith.divf %15, %16 : vector<1x256xf32>
    %18 = vector.broadcast %10 : vector<1x256xf32> to vector<32x256xf32>
    %19 = arith.subf %6, %18 : vector<32x256xf32>
    %cst_10 = arith.constant 9.99999974E-6 : f32
    %20 = vector.broadcast %cst_10 : f32 to vector<1x256xf32>
    %21 = arith.addf %17, %20 : vector<1x256xf32>
    %22 = math.rsqrt %21 : vector<1x256xf32>
    %23 = vector.broadcast %22 : vector<1x256xf32> to vector<32x256xf32>
    %24 = arith.mulf %19, %23 : vector<32x256xf32>
    %c0_11 = arith.constant 0 : index
    %c0_12 = arith.constant 0 : index
    %25 = vector.load %arg4[%c0_11, %c0_12] : memref<32x1xf32, #tpu.memory_space<vmem>>, vector<32x1xf32>
    %26 = vector.broadcast %25 : vector<32x1xf32> to vector<32x256xf32>
    %27 = arith.mulf %24, %26 : vector<32x256xf32>
    %c0_13 = arith.constant 0 : index
    %c0_14 = arith.constant 0 : index
    %28 = vector.load %arg5[%c0_13, %c0_14] : memref<32x1xf32, #tpu.memory_space<vmem>>, vector<32x1xf32>
    %29 = vector.broadcast %28 : vector<32x1xf32> to vector<32x256xf32>
    %30 = arith.addf %27, %29 : vector<32x256xf32>
    %c0_15 = arith.constant 0 : index
    %c0_16 = arith.constant 0 : index
    %31 = vector.load %arg6[%c0_15, %c0_16] : memref<32x256xf32, #tpu.memory_space<vmem>>, vector<32x256xf32>
    %32 = arith.addf %30, %31 : vector<32x256xf32>
    %c0_17 = arith.constant 0 : index
    %c0_18 = arith.constant 0 : index
    %c0_19 = arith.constant 0 : index
    %33 = vector.load %arg7[%c0_17, %c0_18, %c0_19] : memref<1x32x256xf32, #tpu.memory_space<vmem>>, vector<1x32x256xf32>
    %34 = vector.shape_cast %33 : vector<1x32x256xf32> to vector<32x256xf32>
    %35 = vector.shape_cast %32 : vector<32x256xf32> to vector<1x32x256xf32>
    tpu.vector_store %arg7[%c0_17, %c0_18, %c0_19], %35 {strides = array<i32>} : memref<1x32x256xf32, #tpu.memory_space<vmem>>, vector<1x32x256xf32>,
    return
  }
  func.func @transform_0(%arg0: i32) -> (i32, i32, i32) {
    %c0_i32 = arith.constant 0 : i32
    %c0_i32_0 = arith.constant 0 : i32
    %c0_i32_1 = arith.constant 0 : i32
    return %arg0, %c0_i32, %c0_i32_0 : i32, i32, i32
  }
  func.func @transform_1(%arg0: i32) -> (i32, i32) {
    %c0_i32 = arith.constant 0 : i32
    %c0_i32_0 = arith.constant 0 : i32
    %c0_i32_1 = arith.constant 0 : i32
    return %c0_i32, %c0_i32_0 : i32, i32
  }
  func.func @transform_2(%arg0: i32) -> (i32, i32) {
    %c0_i32 = arith.constant 0 : i32
    %c0_i32_0 = arith.constant 0 : i32
    %c0_i32_1 = arith.constant 0 : i32
    return %c0_i32, %c0_i32_0 : i32, i32
  }
  func.func @transform_3(%arg0: i32) -> (i32, i32) {
    %c0_i32 = arith.constant 0 : i32
    %c0_i32_0 = arith.constant 0 : i32
    %c0_i32_1 = arith.constant 0 : i32
    return %c0_i32, %c0_i32_0 : i32, i32
  }
  func.func @transform_4(%arg0: i32) -> (i32, i32) {
    %c0_i32 = arith.constant 0 : i32
    %c0_i32_0 = arith.constant 0 : i32
    %c0_i32_1 = arith.constant 0 : i32
    return %c0_i32, %c0_i32_0 : i32, i32
  }
  func.func @transform_5(%arg0: i32) -> (i32, i32) {
    %c0_i32 = arith.constant 0 : i32
    %c0_i32_0 = arith.constant 0 : i32
    %c0_i32_1 = arith.constant 0 : i32
    return %c0_i32, %c0_i32_0 : i32, i32
  }
  func.func @transform_6(%arg0: i32) -> (i32, i32, i32) {
    %c0_i32 = arith.constant 0 : i32
    %c0_i32_0 = arith.constant 0 : i32
    %c0_i32_1 = arith.constant 0 : i32
    return %arg0, %c0_i32, %c0_i32_0 : i32, i32, i32
  }
}

</mosaic_0001>

<bundles_post_ra>
// kernel: tpu_custom_call.1
= control target key start
LH: loop header
LB: loop body
LE: loop exit
PB: predicated region body
PF: predicated region fallthrough
CT: control target
= control target key end

     0   :  { %11 = vsyncpa [#allocation3], 0  ;;  %s975_s0 = inlined_call_operand.vmem [shape: f32[2,16,256], index: 0, kind: input, shape index: {}]   ;;  %s976_s1 = inlined_call_operand.vmem [shape: f32[32,16], index: 1, kind: input, shape index: {}]   ;;  %s977_s2 = inlined_call_operand.vmem [shape: f32[32,1], index: 2, kind: input, shape index: {}]   ;;  %s978_s3 = inlined_call_operand.vmem [shape: f32[32,1], index: 3, kind: input, shape index: {}]   ;;  %s979_s4 = inlined_call_operand.vmem [shape: f32[32,1], index: 4, kind: input, shape index: {}]   ;;  %s980_s5 = inlined_call_operand.vmem [shape: f32[32,256], index: 5, kind: input, shape index: {}]   ;;  %s981_s6 = inlined_call_operand.hbm [shape: f32[2,32,256], index: 6, kind: output, shape index: {}]  }
   0x1   :  { %13 = vsyncpa [#allocation3 + $0x1], 0  ;;  %s790_s21 = smov 0   ;;  %s792_s22 = smov 0  }
   0x2   :  { %s794_s23 = smov 0   ;;  %s796_s24 = smov 0  }
   0x3 LB: > { %s811_s25 = sadd.s32 4294967295, %s748_s24   ;;  %s617_s26 = sadd.s32 4294967294, %s748_s24   ;;  %s748_s24 = sphi %s796_s24, %s987_s24   ;;  %s744_s23 = sphi %s794_s23, %s986_s23   ;;  %s740_s22 = sphi %s792_s22, %s985_s22   ;;  %s736_s21 = sphi %s790_s21, %s984_s21  }
   0x4   : > { %s815_s27 = sadd.s32 1, %s748_s24   ;;  %s157_s28 = sadd.s32 1, %s744_s23 }
   0x5   : > { %s154_s29 = ssub.s32 %s748_s24, %s815_s27  ;;  %p167_p0 = scmp.ne.s32.totalorder %s744_s23, %s740_s22 }
   0x6   : > { %p155_p1 = scmp.eq.s32.totalorder %s154_s29, 0  ;;  %p168_p2 = scmp.eq.s32.totalorder %s811_s25, 1 }
   0x7   : > { %p173_p3 = scmp.ne.s32.totalorder %s740_s22, %s736_s21  ;;  %p174_p4 = scmp.eq.s32.totalorder %s617_s26, 1 }
   0x8   : > { %s826_s30 = scalar_select %p155_p1, %s744_s23, %s157_s28  }
   0x9   : > { %p828_p5 = por %p168_p2, %p167_p0  ;;  %p832_p6 = por %p174_p4, %p173_p3 }
   0xa   : > { %p620_p7 = scmp.ge.s32.totalorder %s748_s24, 1  ;;  %p215_p8 = scmp.lt.s32.totalorder %s748_s24, 3 }
   0xc   : > { %p216_p9 = pnand %p620_p7, %p215_p8 }
   0xd   : > { %p245_p10 = scmp.lt.s32.totalorder (!%p216_p9), %s811_s25, 1  ;;  %s242_s16 = sand.u32 (!%p216_p9), 1, %s740_s22  }
   0xe   : > { %219 = sbr.rel (%p216_p9) target bundleno = 313 (0x139), region = 44  ;;  %s935_s10 = scalar_lea.sflag (!%p216_p9), [#allocation3], %s242_s16 }
   0xf   : > { %s752_s12 = smov (!%p216_p9), [#allocation2]  }
  0x13   : > { %v750_v0 = vmov 0.0   ;;  %v258_v1 = vld [vmem:[%s977_s2] sm:$0xff]  ;;  %v260_v2 = vld [vmem:[%s977_s2 + $0x10] sm:$0xff]  ;;  %s246_s13 = scalar_select %p245_p10, %s811_s25, 1  ;;  %v751_v3 = vmov 0   ;;  %vm282_vm0 = vcmask 130048  }
  0x14   : > { %359 = vmatprep.mubr.f32.mxu0 %v750_v0  ;;  %371 = vmatprep.mubr.f32.mxu1 %v750_v0  ;;  %v250_v8 = vld [vmem:[%s976_s1] sm:$0xff]  ;;  %v252_v9 = vld [vmem:[%s976_s1 + $0x10] sm:$0xff]  ;;  %v259_v10 = vld [vmem:[%s977_s2 + $0x8] sm:$0xff] }
  0x15   : > { %682 = vset.pattern.permute.xlu0 %v751_v3  ;;  %683 = vset.pattern.permute.xlu1 %v751_v3  ;;  %s633_s14 = sshll.u32 %s246_s13, 5  ;;  %v261_v11 = vld [vmem:[%s977_s2 + $0x18] sm:$0xff]  ;;  %v251_v12 = vld [vmem:[%s976_s1 + $0x8] sm:$0xff]  ;;  %v453_v14 = vld [vmem:[%s978_s3] sm:$0xff]  ;;  %s634_s13 = sshll.u32 %s811_s25, 10 }
  0x16   : > { %264 = vperm.xlu0 %682, %v258_v1   ;;  %274 = vperm.xlu1 %683, %v260_v2   ;;  %s249_s17 = scalar_lea.vmem %s975_s0, %s633_s14  ;;  %v253_v13 = vld [vmem:[%s976_s1 + $0x18] sm:$0xff]  ;;  %v454_v15 = vld [vmem:[%s978_s3 + $0x8] sm:$0xff]  ;;  %v455_v16 = vld [vmem:[%s978_s3 + $0x10] sm:$0xff]  ;;  %s929_s9 = scalar_lea.hbm %s981_s6, %s634_s13 }
  0x17   : > { %v257_v4 = vld [vmem:[%s249_s17 + $0x18] sm:$0xff]  ;;  %v256_v5 = vld [vmem:[%s249_s17 + $0x10] sm:$0xff]  ;;  %v255_v6 = vld [vmem:[%s249_s17 + $0x8] sm:$0xff]  ;;  %s692_s13 = sshll.u32 %s752_s12, 4  ;;  %s693_s13 = int_to_ptr.vmem [resolvable:$false] %s692_s13 }
  0x18   : > { %323 = vmatprep.subr.mxu0 %v257_v4  ;;  %635 = vmatprep.subr.mxu1 %v257_v4  ;;  %v254_v7 = vld [vmem:[%s249_s17] sm:$0xff]  ;;  %v456_v17 = vld [vmem:[%s978_s3 + $0x18] sm:$0xff]  ;;  %v486_v19 = vld [vmem:[%s979_s4 + $0x8] sm:$0xff]  ;;  %s898_s17 = sshll.u32 %s242_s16, 6  ;;  %s694_s18 = scalar_lea.vmem %s693_s13, 2048 }
  0x19   : > { %324 = vmatpush1.msra.mxu0 %v256_v5  ;;  %637 = vmatpush1.msra.mxu1 %v256_v5  ;;  %v485_v18 = vld [vmem:[%s979_s4] sm:$0xff]  ;;  %v487_v20 = vld [vmem:[%s979_s4 + $0x10] sm:$0xff]  ;;  %v488_v21 = vld [vmem:[%s979_s4 + $0x18] sm:$0xff]  ;;  %s244_s14 = scalar_lea.vmem [#allocation2], %s898_s17 }
  0x1a   : > { %325 = vmatprep.subr.mxu0 %v255_v6  ;;  %636 = vmatprep.subr.mxu1 %v255_v6  ;;  %s555_s15 = sshll.u32 %s244_s14, 4  ;;  %s931_s15 = int_to_ptr.vmem [resolvable:$true] %s555_s15 }
  0x1b   : > { %326 = vmatpush1.msra.mxu0 %v254_v7  ;;  %638 = vmatpush1.msra.mxu1 %v254_v7  ;;  %s688_s11 = scalar_lea.vmem %s931_s15, 1024  ;;  %p695_p0 = scmp.lt.s32.totalorder %s931_s15, %s693_s13 }
  0x1c   : > { %624 = vmatmul.mubr.msk.f32.vlgmr.msra.gmra.mxu0 %vm282_vm0, %v250_v8  ;;  %626 = vmatmul.mubr.msk.f32.vlgmr.msra.gmra.mxu1 %vm282_vm0, %v252_v9  ;;  %p689_p11 = scmp.ne.s32.totalorder %s931_s15, %s688_s11  ;;  %p696_p1 = scmp.lt.s32.totalorder %s694_s18, %s688_s11 }
  0x1d   : > { %365 = vmatprep.mubr.f32.mxu0 %v750_v0  ;;  %377 = vmatprep.mubr.f32.mxu1 %v750_v0 }
  0x1e   : > { %269 = vperm.xlu0 %682, %v259_v10   ;;  %279 = vperm.xlu1 %683, %v261_v11   ;;  %p690_p12 = pnand %p689_p11, %p828_p5  ;;  %p697_p2 = por %p696_p1, %p695_p0 }
  0x20   : > { %625 = vmatmul.mubr.msk.f32.gmra.mxu0 %vm282_vm0, %v251_v12  ;;  %627 = vmatmul.mubr.msk.f32.gmra.mxu1 %vm282_vm0, %v253_v13  ;;  %p691_p13 = pneg %p690_p12 }
  0x22   : > { %459 = vperm.xlu0 %682, %v453_v14   ;;  %464 = vperm.xlu1 %683, %v454_v15   ;;  %p698_p3 = pnand %p697_p2, %p691_p13 }
  0x26   : > { %469 = vperm.xlu0 %682, %v455_v16   ;;  %474 = vperm.xlu1 %683, %v456_v17  }
  0x2a   : > { %491 = vperm.xlu0 %682, %v485_v18   ;;  %496 = vperm.xlu1 %683, %v486_v19  }
  0x2e   : > { %501 = vperm.xlu0 %682, %v487_v20   ;;  %506 = vperm.xlu1 %683, %v488_v21  }
  0x91   : > { %v265_v22 = vpop.permute.xlu0 %264  ;;  %v275_v25 = vpop.permute.xlu1 %274 }
  0x99   : > { %v270_v28 = vpop.permute.xlu0 %269  ;;  %v280_v38 = vpop.permute.xlu1 %279 }
  0xdc   : > { %v361_v23 = vpop.f32.mrf.mxu0  ;;  %v373_v24 = vpop.f32.mrf.mxu1 }
  0xdd   : > { %v362_v31 = vadd.f32 %v361_v23, %v265_v22  ;;  %v374_v34 = vadd.f32 %v373_v24, %v275_v25 }
  0xde   : > { %v363_v26 = vpop.f32.mrf.mxu0  ;;  %v375_v27 = vpop.f32.mrf.mxu1 }
  0xdf   : > { %v364_v35 = vadd.f32 %v363_v26, %v265_v22  ;;  %v376_v40 = vadd.f32 %v375_v27, %v275_v25 }
  0xe0   : > { %v367_v29 = vpop.f32.mrf.mxu0  ;;  %v379_v30 = vpop.f32.mrf.mxu1 }
  0xe1   : > { %v368_v32 = vadd.f32 %v367_v29, %v270_v28  ;;  %v380_v41 = vadd.f32 %v379_v30, %v280_v38 }
  0xe2   : > { %v369_v33 = vpop.f32.mrf.mxu0  ;;  %v381_v39 = vpop.f32.mrf.mxu1 }
  0xe3   : > { %v384_v36 = vadd.f32 %v368_v32, %v362_v31  ;;  %v370_v37 = vadd.f32 %v369_v33, %v270_v28  ;;  %v382_v45 = vadd.f32 %v381_v39, %v280_v38 }
  0xe5   : > { %v385_v42 = vadd.f32 %v384_v36, %v374_v34  ;;  %v393_v43 = vadd.f32 %v370_v37, %v364_v35 }
  0xe7   : > { %v386_v44 = vadd.f32 %v385_v42, %v380_v41  ;;  %v394_v46 = vadd.f32 %v393_v43, %v376_v40 }
  0xe9   : > { %v387_v47 = vrot.slane %v386_v44, 4  ;;  %v395_v48 = vadd.f32 %v394_v46, %v382_v45 }
  0xeb   : > { %v388_v49 = vadd.f32 %v387_v47, %v386_v44  ;;  %v396_v50 = vrot.slane %v395_v48, 4 }
  0xed   : > { %v389_v51 = vrot.slane %v388_v49, 2  ;;  %v397_v52 = vadd.f32 %v396_v50, %v395_v48 }
  0xef   : > { %v390_v53 = vadd.f32 %v389_v51, %v388_v49  ;;  %v398_v54 = vrot.slane %v397_v52, 2  ;;  %v517_v51 = vld [vmem:[%s980_s5] sm:$0xff] }
  0xf1   : > { %v391_v55 = vrot.slane %v390_v53, 1  ;;  %v399_v56 = vadd.f32 %v398_v54, %v397_v52  ;;  %v519_v54 = vld [vmem:[%s980_s5 + $0x10] sm:$0xff] }
  0xf3   : > { %v392_v57 = vadd.f32 %v391_v55, %v390_v53  ;;  %v400_v58 = vrot.slane %v399_v56, 1  ;;  %v521_v55 = vld [vmem:[%s980_s5 + $0x20] sm:$0xff] }
  0xf5   : > { %v403_v59 = vmul.f32 0.03125, %v392_v57  ;;  %v401_v60 = vadd.f32 %v400_v58, %v399_v56  ;;  %v523_v56 = vld [vmem:[%s980_s5 + $0x30] sm:$0xff] }
  0xf7   : > { %v405_v61 = vsub.f32 %v362_v31, %v403_v59  ;;  %v407_v62 = vsub.f32 %v368_v32, %v403_v59  ;;  %v409_v63 = vsub.f32 %v374_v34, %v403_v59  ;;  %v404_v0 = vmul.f32 0.03125, %v401_v60  ;;  %v460_v34 = vpop.permute.xlu0 %459 }
  0xf8   : > { %v411_v1 = vsub.f32 %v380_v41, %v403_v59 }
  0xf9   : > { %v413_v2 = vmul.f32 %v405_v61, %v405_v61  ;;  %v415_v3 = vmul.f32 %v407_v62, %v407_v62  ;;  %v406_v4 = vsub.f32 %v364_v35, %v404_v0  ;;  %v408_v5 = vsub.f32 %v370_v37, %v404_v0  ;;  %v465_v35 = vpop.permute.xlu1 %464 }
  0xfa   : > { %v410_v6 = vsub.f32 %v376_v40, %v404_v0  ;;  %v417_v7 = vmul.f32 %v409_v63, %v409_v63  ;;  %v412_v9 = vsub.f32 %v382_v45, %v404_v0  ;;  %v419_v12 = vmul.f32 %v411_v1, %v411_v1 }
  0xfb   : > { %v421_v8 = vadd.f32 %v415_v3, %v413_v2  ;;  %v414_v10 = vmul.f32 %v406_v4, %v406_v4  ;;  %v416_v11 = vmul.f32 %v408_v5, %v408_v5  ;;  %v470_v38 = vpop.permute.xlu0 %469 }
  0xfc   : > { %v418_v14 = vmul.f32 %v410_v6, %v410_v6  ;;  %v420_v17 = vmul.f32 %v412_v9, %v412_v9 }
  0xfd   : > { %v422_v13 = vadd.f32 %v421_v8, %v417_v7  ;;  %v430_v15 = vadd.f32 %v416_v11, %v414_v10  ;;  %v475_v39 = vpop.permute.xlu1 %474  ;;  %v518_v10 = vld [vmem:[%s980_s5 + $0x8] sm:$0xff] }
  0xff   : > { %v423_v16 = vadd.f32 %v422_v13, %v419_v12  ;;  %v431_v18 = vadd.f32 %v430_v15, %v418_v14  ;;  %v492_v40 = vpop.permute.xlu0 %491  ;;  %v522_v12 = vld [vmem:[%s980_s5 + $0x28] sm:$0xff]  ;;  %v524_v13 = vld [vmem:[%s980_s5 + $0x38] sm:$0xff] }
 0x101   : > { %v424_v19 = vrot.slane %v423_v16, 4  ;;  %v432_v20 = vadd.f32 %v431_v18, %v420_v17  ;;  %v497_v41 = vpop.permute.xlu1 %496 }
 0x103   : > { %v425_v21 = vadd.f32 %v424_v19, %v423_v16  ;;  %v433_v22 = vrot.slane %v432_v20, 4  ;;  %v502_v53 = vpop.permute.xlu0 %501 }
 0x105   : > { %v426_v23 = vrot.slane %v425_v21, 2  ;;  %v434_v24 = vadd.f32 %v433_v22, %v432_v20  ;;  %v507_v57 = vpop.permute.xlu1 %506 }
 0x107   : > { %v427_v25 = vadd.f32 %v426_v23, %v425_v21  ;;  %v435_v26 = vrot.slane %v434_v24, 2 }
 0x109   : > { %v428_v27 = vrot.slane %v427_v25, 1  ;;  %v436_v28 = vadd.f32 %v435_v26, %v434_v24 }
 0x10b   : > { %v429_v29 = vadd.f32 %v428_v27, %v427_v25  ;;  %v437_v30 = vrot.slane %v436_v28, 1 }
 0x10d   : > { %v439_v31 = vmul.f32 0.03125, %v429_v29  ;;  %v438_v32 = vadd.f32 %v437_v30, %v436_v28 }
 0x10f   : > { %v441_v33 = vadd.f32 1e-05, %v439_v31  ;;  %v440_v36 = vmul.f32 0.03125, %v438_v32 }
 0x111   : > { %684 = vrsqrt.f32 %v441_v33  ;;  %v442_v37 = vadd.f32 1e-05, %v440_v36 }
 0x113   : > { %686 = vrsqrt.f32 %v442_v37 }
 0x11e   : > { %v685_v42 = vpop.eup %684 }
 0x11f   : > { %v445_v43 = vmul.f32 %v685_v42, %v405_v61  ;;  %v447_v44 = vmul.f32 %v685_v42, %v407_v62  ;;  %v449_v45 = vmul.f32 %v685_v42, %v409_v63  ;;  %v451_v46 = vmul.f32 %v685_v42, %v411_v1 }
 0x120   : > { %v687_v47 = vpop.eup %686 }
 0x121   : > { %v477_v48 = vmul.f32 %v460_v34, %v445_v43  ;;  %v479_v49 = vmul.f32 %v465_v35, %v447_v44  ;;  %v481_v50 = vmul.f32 %v470_v38, %v449_v45  ;;  %v483_v52 = vmul.f32 %v475_v39, %v451_v46 }
 0x122   : > { %v446_v58 = vmul.f32 %v687_v47, %v406_v4  ;;  %v448_v59 = vmul.f32 %v687_v47, %v408_v5  ;;  %v450_v60 = vmul.f32 %v687_v47, %v410_v6  ;;  %v452_v61 = vmul.f32 %v687_v47, %v412_v9  ;;  %v520_v9 = vld [vmem:[%s980_s5 + $0x18] sm:$0xff] }
 0x123   : > { %v509_v62 = vadd.f32 %v492_v40, %v477_v48  ;;  %v511_v63 = vadd.f32 %v497_v41, %v479_v49  ;;  %v513_v0 = vadd.f32 %v502_v53, %v481_v50  ;;  %v515_v1 = vadd.f32 %v507_v57, %v483_v52 }
 0x124   : > { %v478_v2 = vmul.f32 %v460_v34, %v446_v58  ;;  %v480_v3 = vmul.f32 %v465_v35, %v448_v59  ;;  %v482_v7 = vmul.f32 %v470_v38, %v450_v60  ;;  %v484_v8 = vmul.f32 %v475_v39, %v452_v61 }
 0x125   : > { %v525_v11 = vadd.f32 %v517_v51, %v509_v62  ;;  %v527_v4 = vadd.f32 %v519_v54, %v511_v63  ;;  %v529_v5 = vadd.f32 %v521_v55, %v513_v0  ;;  %v531_v6 = vadd.f32 %v523_v56, %v515_v1 }
 0x126   : > { %v510_v14 = vadd.f32 %v492_v40, %v478_v2  ;;  %v512_v15 = vadd.f32 %v497_v41, %v480_v3  ;;  %v514_v16 = vadd.f32 %v502_v53, %v482_v7  ;;  %v516_v17 = vadd.f32 %v507_v57, %v484_v8 }
 0x127   : > { %533 = vst [vmem:[%s244_s14] sm:$0xff] %v525_v11  ;;  %535 = vst [vmem:[%s244_s14 + $0x10] sm:$0xff] %v527_v4 }
 0x128   : > { %537 = vst [vmem:[%s244_s14 + $0x20] sm:$0xff] %v529_v5  ;;  %539 = vst [vmem:[%s244_s14 + $0x30] sm:$0xff] %v531_v6  ;;  %v526_v18 = vadd.f32 %v518_v10, %v510_v14  ;;  %v528_v19 = vadd.f32 %v520_v9, %v512_v15  ;;  %v530_v20 = vadd.f32 %v522_v12, %v514_v16 }
 0x129   : > { %v532_v21 = vadd.f32 %v524_v13, %v516_v17 }
 0x12a   : > { %534 = vst [vmem:[%s244_s14 + $0x8] sm:$0xff] %v526_v18  ;;  %536 = vst [vmem:[%s244_s14 + $0x18] sm:$0xff] %v528_v19 }
 0x12b   : > { %538 = vst [vmem:[%s244_s14 + $0x28] sm:$0xff] %v530_v20  ;;  %540 = vst [vmem:[%s244_s14 + $0x38] sm:$0xff] %v532_v21 }
 0x12c   : > { %701 = shalt.err (!%p698_p3)
}
 0x12d   : > { %s702_s16 = scalar_lea.hbm %s929_s9, 1024  ;;  %s706_s20 = scalar_lea.hbm %s981_s6, 2048 }
 0x12e   : > { %p703_p4 = scmp.ne.s32.totalorder %s929_s9, %s702_s16  ;;  %p707_p9 = scmp.lt.s32.totalorder %s929_s9, %s981_s6 }
 0x12f   : > { %p708_p10 = scmp.lt.s32.totalorder %s706_s20, %s702_s16 }
 0x130   : > { %p704_p7 = pnand %p703_p4, %p828_p5 }
 0x131   : > { %p709_p11 = por %p708_p10, %p707_p9 }
 0x132   : > { %p705_p8 = pneg %p704_p7 }
 0x134   : > { %p710_p12 = pnand %p709_p11, %p705_p8 }
 0x136   : > { %713 = shalt.err (!%p710_p12)
}
 0x137   : > { %s753_s29 = smov 256   ;;  %s754_s25 = smov 16  }
 0x138   : > { %639 = dma.vmem_to_hbm [thread:$0]  (%p828_p5), %s931_s15, 1024, %s929_s9, %s935_s10, %s753_s29, %s753_s29, %s754_s25  }
 0x139 PF: > { %p645_p13 = scmp.ge.s32.totalorder %s748_s24, 2  ;;  %s570_s17 = sand.u32 1, %s736_s21  }
 0x13a   : > { %s571_s11 = scalar_lea.sflag [#allocation3], %s570_s17 }
 0x13b   : > { %p642_p0 = pnand %p645_p13, %p832_p6 }
 0x13d   : > { %p643_p1 = pneg %p642_p0 }
 0x13f   : > { %731 = dma.done.wait (%p643_p1), %s571_s11, 1024  }
 0x140   : > { %733 = vsyncadd (%p643_p1), %s571_s11, 4294966272  ;;  %p16_p2 = scmp.ge.s32.totalorder %s815_s27, 4   ;;  %s984_s21 = smov %s740_s22 }
 0x141   : > { %s985_s22 = smov %s744_s23  ;;  %s986_s23 = smov %s826_s30 }
 0x142   : > { %s987_s24 = smov %s815_s27  ;;  %18 = sbr.rel (!%p16_p2) target bundleno = 3 (0x3), region = 79 }
 0x147   :  { %576 = vsyncpa [#allocation3], 1 }
 0x148   :  { %578 = vsyncpa [#allocation3 + $0x1], 1 }

</bundles_post_ra>
